<compile_context>
chip_gen: v7x
topology: tpu7x:2x2x1
jax: 0.10.0
libtpu: 0.0.40
codegen_flags: <defaults>
</compile_context>

<pallas_src>
import jax
import jax.numpy as jnp
from jax.experimental import pallas as pl
from jax.experimental.pallas import tpu as pltpu

HIDDEN = 128


def _round_up(x, m):
    return (x + m - 1) // m * m


def dqn_kernel(x_ref, w1_ref, w2_ref, w3_ref, b_ref, out_ref):
    """Fused fc1+ReLU+fc2+ReLU+fc3 on one (tb, in_dim) batch tile.

    x_ref   : (tb, in_dim) f32  -- cast to bf16 on the VPU (free under MXU)
    w*_ref  : bf16 (in, out) weights, resident in VMEM across all grid steps
    b_ref   : (3, 128) f32 packed biases (row 0 = b1, 1 = b2, 2 = b3 padded)
    out_ref : (tb, out_dim) f32 -- true-width output (masked vst, negligible)
    """
    out_dim = out_ref.shape[-1]
    x = x_ref[...].astype(jnp.bfloat16)

    h1 = jnp.dot(x, w1_ref[...], preferred_element_type=jnp.float32) + b_ref[0:1, :]
    h1 = jnp.maximum(h1, 0.0).astype(jnp.bfloat16)

    h2 = jnp.dot(h1, w2_ref[...], preferred_element_type=jnp.float32) + b_ref[1:2, :]
    h2 = jnp.maximum(h2, 0.0).astype(jnp.bfloat16)

    # NOTE: 128-wide hidden layers fill only half of the 256-wide v6e/v7x MXU;
    # large tb (big M) amortizes that.  Packing two heads along N would fill it
    # but is a workload-level change, not part of this module.
    h3 = jnp.dot(h2, w3_ref[...], preferred_element_type=jnp.float32) + b_ref[2:3, :out_dim]
    out_ref[...] = h3


def prepare_params(params):
    """One-time prep: transpose weights to (in, out), cast matmul operands to
    bf16, pack the three biases into a single (3, 128) f32 array."""
    input_dim = params["w1"].shape[1]
    output_dim = params["w3"].shape[0]

    w1 = params["w1"].T.astype(jnp.bfloat16)          # (in, 128)
    w2 = params["w2"].T.astype(jnp.bfloat16)          # (128, 128)
    w3 = params["w3"].T.astype(jnp.bfloat16)          # (128, out) true width

    b_all = jnp.zeros((3, HIDDEN), jnp.float32)
    b_all = b_all.at[0].set(params["b1"].astype(jnp.float32))
    b_all = b_all.at[1].set(params["b2"].astype(jnp.float32))
    b_all = b_all.at[2, :output_dim].set(params["b3"].astype(jnp.float32))

    return {"w1": w1, "w2": w2, "w3": w3, "b": b_all,
            "input_dim": int(input_dim), "output_dim": int(output_dim)}


def dqn_forward(x, prepared, *, min_block_b=256, max_block_b=2048, target_steps=4):
    """x: (B, input_dim) f32  ->  (B, output_dim) f32 Q-values."""
    B, in_dim = x.shape
    out_dim = prepared["output_dim"]
    w1, w2, w3, b = prepared["w1"], prepared["w2"], prepared["w3"], prepared["b"]

    # Pad the batch only to a sublane multiple (usually a no-op).  No dtype
    # cast / lane pad in the wrapper: the kernel reads f32 and casts on-chip.
    B_pad = _round_up(B, 8)
    if B_pad != B:
        x = jnp.pad(x, ((0, B_pad - B), (0, 0)))

    # Batch tile: one tile for small batches (launch/DMA bound anyway); for
    # large batches aim for ~target_steps tiles so x/out DMA pipelines and the
    # "parallel" batch axis can shard across TensorCores (v7x megacore).
    if B_pad <= min_block_b:
        tb = B_pad
    else:
        tb = min(max_block_b,
                 max(min_block_b, _round_up(pl.cdiv(B_pad, target_steps), 8)))
    # Keep double-buffered f32 x-tiles well inside v7x's 64 MiB VMEM even for
    # large observation vectors.
    vmem_x_budget = 16 * 1024 * 1024
    tb_cap = max(8, (vmem_x_budget // (2 * 4 * in_dim)) // 8 * 8)
    tb = min(tb, tb_cap)
    grid = (pl.cdiv(B_pad, tb),)

    flops = 2 * B_pad * (in_dim * HIDDEN + HIDDEN * HIDDEN + HIDDEN * out_dim)
    bytes_accessed = (
        B_pad * in_dim * 4                              # x (f32 read)
        + (w1.size + w2.size + w3.size) * 2             # bf16 weights
        + b.size * 4                                    # packed biases
        + B_pad * out_dim * 4                           # true-width f32 output
    )

    out = pl.pallas_call(
        dqn_kernel,
        out_shape=jax.ShapeDtypeStruct((B_pad, out_dim), jnp.float32),
        grid_spec=pltpu.PrefetchScalarGridSpec(
            num_scalar_prefetch=0,
            grid=grid,
            in_specs=[
                pl.BlockSpec((tb, in_dim), lambda i: (i, 0)),   # x: batch-tiled
                pl.BlockSpec(w1.shape, lambda i: (0, 0)),       # weights stay
                pl.BlockSpec(w2.shape, lambda i: (0, 0)),       #   resident in
                pl.BlockSpec(w3.shape, lambda i: (0, 0)),       #   VMEM
                pl.BlockSpec(b.shape, lambda i: (0, 0)),        # packed biases
            ],
            out_specs=pl.BlockSpec((tb, out_dim), lambda i: (i, 0)),
        ),
        compiler_params=pltpu.CompilerParams(
            dimension_semantics=("parallel",),          # megacore shard on v7x
            vmem_limit_bytes=32 * 1024 * 1024,
        ),
        cost_estimate=pl.CostEstimate(
            flops=flops, transcendentals=0, bytes_accessed=bytes_accessed),
    )(x, w1, w2, w3, b)

    return out if B_pad == B else out[:B]


def init_dqn_params(key, input_dim, output_dim, hidden=HIDDEN):
    """Deterministic synthetic init (PyTorch nn.Linear-style uniform bounds)."""
    ks = jax.random.split(key, 6)

    def linear_init(kw, kb, fan_in, fan_out):
        bound = 1.0 / jnp.sqrt(fan_in)
        w = jax.random.uniform(kw, (fan_out, fan_in), jnp.float32, -bound, bound)
        b = jax.random.uniform(kb, (fan_out,), jnp.float32, -bound, bound)
        return w, b

    w1, b1 = linear_init(ks[0], ks[1], input_dim, hidden)
    w2, b2 = linear_init(ks[2], ks[3], hidden, hidden)
    w3, b3 = linear_init(ks[4], ks[5], hidden, output_dim)
    return {"w1": w1, "b1": b1, "w2": w2, "b2": b2, "w3": w3, "b3": b3}


def dqn_reference(x, params):
    """Pure-JAX f32 reference matching PyTorch semantics exactly."""
    h = jnp.maximum(x @ params["w1"].T + params["b1"], 0.0)
    h = jnp.maximum(h @ params["w2"].T + params["b2"], 0.0)
    return h @ params["w3"].T + params["b3"]


if __name__ == "__main__":
    key = jax.random.PRNGKey(0)
    k_params, k_x = jax.random.split(key)

    batch = 256        # amortize launch overhead over a real replay batch
    input_dim = 32     # e.g. flattened game-state observation
    output_dim = 4     # number of discrete actions

    params = init_dqn_params(k_params, input_dim, output_dim)
    prepared = prepare_params(params)   # one-time transpose / bf16 / packing

    x = jax.random.normal(k_x, (batch, input_dim), jnp.float32)

    out = jax.block_until_ready(dqn_forward(x, prepared))

    ref = dqn_reference(x, params)
    assert out.shape == (batch, output_dim)
    # bf16 matmul operands with f32 accumulation -> relative-error check.
    rel_err = float(jnp.max(jnp.abs(out - ref)) / (jnp.max(jnp.abs(ref)) + 1e-6))
    assert rel_err < 2e-2, f"mismatch vs reference: rel_err={rel_err}"

    print("KERNEL_OK")
</pallas_src>

<mosaic_0001>
module attributes {stable_mosaic.version = 11 : i64} {
  func.func @dqn_kernel(%arg0: i32, %arg1: memref<256x32xf32, #tpu.memory_space<vmem>>, %arg2: memref<32x128xbf16, #tpu.memory_space<vmem>>, %arg3: memref<128x128xbf16, #tpu.memory_space<vmem>>, %arg4: memref<128x4xbf16, #tpu.memory_space<vmem>>, %arg5: memref<3x128xf32, #tpu.memory_space<vmem>>, %arg6: memref<256x4xf32, #tpu.memory_space<vmem>>) attributes {dimension_semantics = [#tpu.dimension_semantics<parallel>], iteration_bounds = array<i64: 1>, scalar_prefetch = 0 : i64, scratch_operands = 0 : i64, tpu.core_type = #tpu.core_type<tc>, window_params = [{transform_indices = @transform_0, window_bounds = array<i64: 256, 32>}, {pipeline_mode = #tpu.pipeline_mode<synchronous>, transform_indices = @transform_1, window_bounds = array<i64: 32, 128>}, {pipeline_mode = #tpu.pipeline_mode<synchronous>, transform_indices = @transform_2, window_bounds = array<i64: 128, 128>}, {pipeline_mode = #tpu.pipeline_mode<synchronous>, transform_indices = @transform_3, window_bounds = array<i64: 128, 4>}, {pipeline_mode = #tpu.pipeline_mode<synchronous>, transform_indices = @transform_4, window_bounds = array<i64: 3, 128>}, {transform_indices = @transform_5, window_bounds = array<i64: 256, 4>}]} {
    %c0 = arith.constant 0 : index
    %c0_0 = arith.constant 0 : index
    %0 = vector.load %arg1[%c0, %c0_0] : memref<256x32xf32, #tpu.memory_space<vmem>>, vector<256x32xf32>
    %1 = arith.truncf %0 : vector<256x32xf32> to vector<256x32xbf16>
    %c0_1 = arith.constant 0 : index
    %c0_2 = arith.constant 0 : index
    %2 = vector.load %arg2[%c0_1, %c0_2] : memref<32x128xbf16, #tpu.memory_space<vmem>>, vector<32x128xbf16>
    %cst = arith.constant dense<0.000000e+00> : vector<256x128xf32>
    %3 = tpu.matmul %1, %2, %cst {dimension_numbers = #tpu.dot_dimension_numbers<[1], [0], [0], [1], [0, 0, 1, 1], [], []>} : vector<256x32xbf16>, vector<32x128xbf16>, vector<256x128xf32> -> vector<256x128xf32>
    %c0_3 = arith.constant 0 : index
    %c0_4 = arith.constant 0 : index
    %4 = vector.load %arg5[%c0_3, %c0_4] : memref<3x128xf32, #tpu.memory_space<vmem>>, vector<1x128xf32>
    %5 = vector.broadcast %4 : vector<1x128xf32> to vector<256x128xf32>
    %6 = arith.addf %3, %5 : vector<256x128xf32>
    %cst_5 = arith.constant 0.000000e+00 : f32
    %7 = vector.broadcast %cst_5 : f32 to vector<256x128xf32>
    %8 = arith.maximumf %6, %7 : vector<256x128xf32>
    %9 = arith.truncf %8 : vector<256x128xf32> to vector<256x128xbf16>
    %c0_6 = arith.constant 0 : index
    %c0_7 = arith.constant 0 : index
    %10 = vector.load %arg3[%c0_6, %c0_7] : memref<128x128xbf16, #tpu.memory_space<vmem>>, vector<128x128xbf16>
    %cst_8 = arith.constant dense<0.000000e+00> : vector<256x128xf32>
    %11 = tpu.matmul %9, %10, %cst_8 {dimension_numbers = #tpu.dot_dimension_numbers<[1], [0], [0], [1], [0, 0, 1, 1], [], []>} : vector<256x128xbf16>, vector<128x128xbf16>, vector<256x128xf32> -> vector<256x128xf32>
    %c1 = arith.constant 1 : index
    %c0_9 = arith.constant 0 : index
    %12 = vector.load %arg5[%c1, %c0_9] : memref<3x128xf32, #tpu.memory_space<vmem>>, vector<1x128xf32>
    %13 = vector.broadcast %12 : vector<1x128xf32> to vector<256x128xf32>
    %14 = arith.addf %11, %13 : vector<256x128xf32>
    %cst_10 = arith.constant 0.000000e+00 : f32
    %15 = vector.broadcast %cst_10 : f32 to vector<256x128xf32>
    %16 = arith.maximumf %14, %15 : vector<256x128xf32>
    %17 = arith.truncf %16 : vector<256x128xf32> to vector<256x128xbf16>
    %c0_11 = arith.constant 0 : index
    %c0_12 = arith.constant 0 : index
    %18 = vector.load %arg4[%c0_11, %c0_12] : memref<128x4xbf16, #tpu.memory_space<vmem>>, vector<128x4xbf16>
    %cst_13 = arith.constant dense<0.000000e+00> : vector<256x4xf32>
    %19 = tpu.matmul %17, %18, %cst_13 {dimension_numbers = #tpu.dot_dimension_numbers<[1], [0], [0], [1], [0, 0, 1, 1], [], []>} : vector<256x128xbf16>, vector<128x4xbf16>, vector<256x4xf32> -> vector<256x4xf32>
    %c2 = arith.constant 2 : index
    %c0_14 = arith.constant 0 : index
    %20 = vector.load %arg5[%c2, %c0_14] : memref<3x128xf32, #tpu.memory_space<vmem>>, vector<1x4xf32>
    %21 = vector.broadcast %20 : vector<1x4xf32> to vector<256x4xf32>
    %22 = arith.addf %19, %21 : vector<256x4xf32>
    %c0_15 = arith.constant 0 : index
    %c0_16 = arith.constant 0 : index
    %23 = vector.load %arg6[%c0_15, %c0_16] : memref<256x4xf32, #tpu.memory_space<vmem>>, vector<256x4xf32>
    tpu.vector_store %arg6[%c0_15, %c0_16], %22 {strides = array<i32>} : memref<256x4xf32, #tpu.memory_space<vmem>>, vector<256x4xf32>,
    return
  }
  func.func @transform_0(%arg0: i32) -> (i32, i32) {
    %c0_i32 = arith.constant 0 : i32
    %c0_i32_0 = arith.constant 0 : i32
    return %arg0, %c0_i32 : i32, i32
  }
  func.func @transform_1(%arg0: i32) -> (i32, i32) {
    %c0_i32 = arith.constant 0 : i32
    %c0_i32_0 = arith.constant 0 : i32
    %c0_i32_1 = arith.constant 0 : i32
    return %c0_i32, %c0_i32_0 : i32, i32
  }
  func.func @transform_2(%arg0: i32) -> (i32, i32) {
    %c0_i32 = arith.constant 0 : i32
    %c0_i32_0 = arith.constant 0 : i32
    %c0_i32_1 = arith.constant 0 : i32
    return %c0_i32, %c0_i32_0 : i32, i32
  }
  func.func @transform_3(%arg0: i32) -> (i32, i32) {
    %c0_i32 = arith.constant 0 : i32
    %c0_i32_0 = arith.constant 0 : i32
    %c0_i32_1 = arith.constant 0 : i32
    return %c0_i32, %c0_i32_0 : i32, i32
  }
  func.func @transform_4(%arg0: i32) -> (i32, i32) {
    %c0_i32 = arith.constant 0 : i32
    %c0_i32_0 = arith.constant 0 : i32
    %c0_i32_1 = arith.constant 0 : i32
    return %c0_i32, %c0_i32_0 : i32, i32
  }
  func.func @transform_5(%arg0: i32) -> (i32, i32) {
    %c0_i32 = arith.constant 0 : i32
    %c0_i32_0 = arith.constant 0 : i32
    return %arg0, %c0_i32 : i32, i32
  }
}

</mosaic_0001>

<bundles_post_ra>
// kernel: tpu_custom_call.1
= control target key start
LH: loop header
LB: loop body
LE: loop exit
PB: predicated region body
PF: predicated region fallthrough
CT: control target
= control target key end

     0   :  { %vm90_vm0 = vcmask 261120   ;;  %vm856_vm1 = vcmask 31744   ;;  %s1594_s1 = inlined_call_operand.vmem [shape: bf16[32,128], index: 1, kind: input, shape index: {}]   ;;  %s1595_s0 = inlined_call_operand.vmem [shape: f32[256,32], index: 0, kind: input, shape index: {}]   ;;  %s1596_s2 = inlined_call_operand.vmem [shape: bf16[128,128], index: 2, kind: input, shape index: {}]   ;;  %s1597_s3 = inlined_call_operand.vmem [shape: bf16[128,4], index: 3, kind: input, shape index: {}]   ;;  %s1598_s4 = inlined_call_operand.vmem [shape: f32[3,128], index: 4, kind: input, shape index: {}]   ;;  %s1599_s5 = inlined_call_operand.vmem [shape: f32[256,4], index: 5, kind: output, shape index: {}]  }
   0x1   :  { %v1132_v0 = vld [vmem:[%s1594_s1] sm:$0xff]   ;;  %v1133_v1 = vld [vmem:[%s1594_s1 + $0x8] sm:$0xff]   ;;  %v23_v5 = vld [vmem:[%s1595_s0 + $0x10] sm:$0xff] }
   0x2   :  { %996 = vmatprep.subr.bf16.mxu0 %v1132_v0  ;;  %v21_v2 = vld [vmem:[%s1595_s0] sm:$0xff]  ;;  %v22_v3 = vld [vmem:[%s1595_s0 + $0x8] sm:$0xff]  ;;  %1128 = vmatprep.subr.bf16.mxu1 %v1132_v0  ;;  %v24_v6 = vld [vmem:[%s1595_s0 + $0x18] sm:$0xff] }
   0x3   :  { %997 = vmatpush3.bf16.msra.mxu0 %v1132_v0  ;;  %v53_v4 = vpack.c.bf16 %v22_v3, %v21_v2  ;;  %1130 = vmatpush3.bf16.msra.mxu1 %v1132_v0  ;;  %v25_v7 = vld [vmem:[%s1595_s0 + $0x20] sm:$0xff]  ;;  %v26_v8 = vld [vmem:[%s1595_s0 + $0x28] sm:$0xff]  ;;  %v54_v9 = vpack.c.bf16 %v24_v6, %v23_v5  ;;  %v39_v14 = vld [vmem:[%s1595_s0 + $0x90] sm:$0xff] }
   0x4   :  { %998 = vmatprep.subr.bf16.mxu0 %v1133_v1  ;;  %1129 = vmatprep.subr.bf16.mxu1 %v1133_v1  ;;  %v55_v10 = vpack.c.bf16 %v26_v8, %v25_v7  ;;  %v37_v11 = vld [vmem:[%s1595_s0 + $0x80] sm:$0xff]  ;;  %v38_v12 = vld [vmem:[%s1595_s0 + $0x88] sm:$0xff]  ;;  %v40_v15 = vld [vmem:[%s1595_s0 + $0x98] sm:$0xff] }
   0x5   :  { %1000 = vmatprep.mubr.msk.bf16.mxu0 %vm90_vm0, %v53_v4  ;;  %v61_v13 = vpack.c.bf16 %v38_v12, %v37_v11  ;;  %v41_v16 = vld [vmem:[%s1595_s0 + $0xa0] sm:$0xff]  ;;  %v62_v17 = vpack.c.bf16 %v40_v15, %v39_v14  ;;  %v42_v18 = vld [vmem:[%s1595_s0 + $0xa8] sm:$0xff]  ;;  %v27_v19 = vld [vmem:[%s1595_s0 + $0x30] sm:$0xff] }
   0x6   :  { %v28_v20 = vld [vmem:[%s1595_s0 + $0x38] sm:$0xff]  ;;  %v29_v21 = vld [vmem:[%s1595_s0 + $0x40] sm:$0xff]  ;;  %v63_v22 = vpack.c.bf16 %v42_v18, %v41_v16  ;;  %v30_v23 = vld [vmem:[%s1595_s0 + $0x48] sm:$0xff] }
   0x7   :  { %999 = vmatpush3.bf16.msra.mxu0 %v1133_v1  ;;  %1131 = vmatpush3.bf16.msra.mxu1 %v1133_v1  ;;  %v43_v24 = vld [vmem:[%s1595_s0 + $0xb0] sm:$0xff]  ;;  %v44_v25 = vld [vmem:[%s1595_s0 + $0xb8] sm:$0xff]  ;;  %v45_v26 = vld [vmem:[%s1595_s0 + $0xc0] sm:$0xff]  ;;  %v56_v29 = vpack.c.bf16 %v28_v20, %v27_v19  ;;  %v57_v31 = vpack.c.bf16 %v30_v23, %v29_v21 }
   0x8   :  { %1016 = vmatprep.mubr.msk.bf16.mxu1 %vm90_vm0, %v61_v13  ;;  %v46_v27 = vld [vmem:[%s1595_s0 + $0xc8] sm:$0xff]  ;;  %v1134_v28 = vld [vmem:[%s1596_s2] sm:$0xff]   ;;  %v64_v32 = vpack.c.bf16 %v44_v25, %v43_v24  ;;  %v31_v34 = vld [vmem:[%s1595_s0 + $0x50] sm:$0xff] }
   0x9   :  { %v1135_v30 = vld [vmem:[%s1596_s2 + $0x8] sm:$0xff]   ;;  %1032 = vmatprep.subr.bf16.mxu1 %v1134_v28  ;;  %v65_v33 = vpack.c.bf16 %v46_v27, %v45_v26  ;;  %v32_v35 = vld [vmem:[%s1595_s0 + $0x58] sm:$0xff]  ;;  %v1136_v36 = vld [vmem:[%s1596_s2 + $0x10] sm:$0xff]  }
   0xa   :  { %1001 = vmatmul.mubr.msk.bf16.vlgmr.msra.gmra.mrb[0].mxu0 %vm90_vm0, %v54_v9  ;;  %1017 = vmatmul.mubr.msk.bf16.vlgmr.msra.gmra.mrb[0].mxu1 %vm90_vm0, %v62_v17  ;;  %v33_v37 = vld [vmem:[%s1595_s0 + $0x60] sm:$0xff]  ;;  %v34_v38 = vld [vmem:[%s1595_s0 + $0x68] sm:$0xff]  ;;  %v47_v39 = vld [vmem:[%s1595_s0 + $0xd0] sm:$0xff]  ;;  %v58_v44 = vpack.c.bf16 %v32_v35, %v31_v34 }
   0xb   :  { %1004 = vmatprep.mubr.msk.bf16.mxu0 %vm90_vm0, %v55_v10  ;;  %1020 = vmatprep.mubr.msk.bf16.mxu1 %vm90_vm0, %v63_v22  ;;  %v48_v40 = vld [vmem:[%s1595_s0 + $0xd8] sm:$0xff]  ;;  %v49_v41 = vld [vmem:[%s1595_s0 + $0xe0] sm:$0xff]  ;;  %v50_v42 = vld [vmem:[%s1595_s0 + $0xe8] sm:$0xff]  ;;  %v59_v45 = vpack.c.bf16 %v34_v38, %v33_v37 }
   0xc   :  { %1033 = vmatpush3.bf16.msra.mxu1 %v1134_v28  ;;  %v1137_v43 = vld [vmem:[%s1596_s2 + $0x18] sm:$0xff]   ;;  %v66_v46 = vpack.c.bf16 %v48_v40, %v47_v39  ;;  %v67_v47 = vpack.c.bf16 %v50_v42, %v49_v41  ;;  %v1138_v48 = vld [vmem:[%s1596_s2 + $0x20] sm:$0xff]   ;;  %v35_v49 = vld [vmem:[%s1595_s0 + $0x70] sm:$0xff] }
   0xd   :  { %1034 = vmatprep.subr.bf16.mxu1 %v1135_v30  ;;  %v36_v50 = vld [vmem:[%s1595_s0 + $0x78] sm:$0xff]  ;;  %v51_v51 = vld [vmem:[%s1595_s0 + $0xf0] sm:$0xff]  ;;  %v1139_v53 = vld [vmem:[%s1596_s2 + $0x28] sm:$0xff]  }
   0xe   :  { %v52_v52 = vld [vmem:[%s1595_s0 + $0xf8] sm:$0xff]  ;;  %v60_v54 = vpack.c.bf16 %v36_v50, %v35_v49  ;;  %v1140_v56 = vld [vmem:[%s1596_s2 + $0x30] sm:$0xff]   ;;  %v1142_v58 = vld [vmem:[%s1597_s3] sm:$0xff]  }
   0xf   :  { %v68_v55 = vpack.c.bf16 %v52_v52, %v51_v51  ;;  %v1141_v57 = vld [vmem:[%s1596_s2 + $0x38] sm:$0xff]   ;;  %v1143_v59 = vld [vmem:[%s1597_s3 + $0x8] sm:$0xff]   ;;  %1080 = vmatprep.subr.bf16.mxu0 %v1142_v58  ;;  %v1144_v60 = vld [vmem:[%s1597_s3 + $0x10] sm:$0xff]  }
  0x10   :  { %1035 = vmatpush3.bf16.msra.mxu1 %v1135_v30  ;;  %1081 = vmatpush3.bf16.msra.mxu0 %v1142_v58  ;;  %v1145_v61 = vld [vmem:[%s1597_s3 + $0x18] sm:$0xff]   ;;  %v1146_v62 = vld [vmem:[%s1597_s3 + $0x20] sm:$0xff]   ;;  %v1147_v63 = vld [vmem:[%s1597_s3 + $0x28] sm:$0xff]  }
  0x11   :  { %1036 = vmatprep.subr.bf16.mxu1 %v1136_v36  ;;  %1082 = vmatprep.subr.bf16.mxu0 %v1143_v59  ;;  %v1343_v0 = vld [vmem:[%s1598_s4] ss:$0 sm:$0xff] }
  0x12   :  { %1005 = vmatmul.mubr.msk.bf16.gmra.mrb[4].mxu0 %vm90_vm0, %v56_v29  ;;  %1021 = vmatmul.mubr.msk.bf16.gmra.mrb[4].mxu1 %vm90_vm0, %v64_v32 }
  0x13   :  { %1008 = vmatprep.mubr.msk.bf16.mxu0 %vm90_vm0, %v57_v31  ;;  %1024 = vmatprep.mubr.msk.bf16.mxu1 %vm90_vm0, %v65_v33 }
  0x14   :  { %1037 = vmatpush3.bf16.msra.mxu1 %v1136_v36  ;;  %1083 = vmatpush3.bf16.msra.mxu0 %v1143_v59 }
  0x15   :  { %1038 = vmatprep.subr.bf16.mxu1 %v1137_v43  ;;  %1084 = vmatprep.subr.bf16.mxu0 %v1144_v60 }
  0x18   :  { %1039 = vmatpush3.bf16.msra.mxu1 %v1137_v43  ;;  %1085 = vmatpush3.bf16.msra.mxu0 %v1144_v60 }
  0x19   :  { %1040 = vmatprep.subr.bf16.mxu1 %v1138_v48  ;;  %1086 = vmatprep.subr.bf16.mxu0 %v1145_v61 }
  0x1a   :  { %1009 = vmatmul.mubr.msk.bf16.gmra.mrb[8].mxu0 %vm90_vm0, %v58_v44  ;;  %1025 = vmatmul.mubr.msk.bf16.gmra.mrb[8].mxu1 %vm90_vm0, %v66_v46 }
  0x1b   :  { %1012 = vmatprep.mubr.msk.bf16.mxu0 %vm90_vm0, %v59_v45  ;;  %1028 = vmatprep.mubr.msk.bf16.mxu1 %vm90_vm0, %v67_v47 }
  0x1c   :  { %1041 = vmatpush3.bf16.msra.mxu1 %v1138_v48  ;;  %1087 = vmatpush3.bf16.msra.mxu0 %v1145_v61 }
  0x1d   :  { %1042 = vmatprep.subr.bf16.mxu1 %v1139_v53  ;;  %1088 = vmatprep.subr.bf16.mxu0 %v1146_v62 }
  0x20   :  { %1043 = vmatpush3.bf16.msra.mxu1 %v1139_v53  ;;  %1089 = vmatpush3.bf16.msra.mxu0 %v1146_v62 }
  0x21   :  { %1044 = vmatprep.subr.bf16.mxu1 %v1140_v56  ;;  %1090 = vmatprep.subr.bf16.mxu0 %v1147_v63 }
  0x22   :  { %1013 = vmatmul.mubr.msk.bf16.gmra.mrb[12].mxu0 %vm90_vm0, %v60_v54  ;;  %1029 = vmatmul.mubr.msk.bf16.gmra.mrb[12].mxu1 %vm90_vm0, %v68_v55 }
  0x24   :  { %1045 = vmatpush3.bf16.msra.mxu1 %v1140_v56  ;;  %1091 = vmatpush3.bf16.msra.mxu0 %v1147_v63 }
  0x25   :  { %1046 = vmatprep.subr.bf16.mxu1 %v1141_v57 }
  0x28   :  { %1047 = vmatpush3.bf16.msra.mxu1 %v1141_v57 }
  0xdd   :  { %v1002_v1 = vpop.f32.mrb[0].mxu0  ;;  %v1018_v4 = vpop.f32.mrb[0].mxu1 }
  0xde   :  { %v182_v2 = vadd.f32 %v1002_v1, %v1343_v0  ;;  %v173_v3 = vpop.f32.mrb[1].mxu0  ;;  %v246_v7 = vadd.f32 %v1018_v4, %v1343_v0  ;;  %v237_v8 = vpop.f32.mrb[1].mxu1 }
  0xdf   :  { %v174_v5 = vadd.f32 %v1343_v0, %v173_v3  ;;  %v1003_v6 = vpop.f32.mrb[2].mxu0  ;;  %v238_v11 = vadd.f32 %v1343_v0, %v237_v8  ;;  %v1019_v12 = vpop.f32.mrb[2].mxu1 }
  0xe0   :  { %v185_v9 = vadd.f32 %v1003_v6, %v1343_v0  ;;  %v176_v10 = vpop.f32.mrb[3].mxu0  ;;  %v318_v14 = vmax.f32 %v246_v7, 0.0  ;;  %v249_v15 = vadd.f32 %v1019_v12, %v1343_v0  ;;  %v240_v16 = vpop.f32.mrb[3].mxu1  ;;  %v302_v17 = vmax.f32 %v182_v2, 0.0 }
  0xe1   :  { %v177_v13 = vadd.f32 %v1343_v0, %v176_v10  ;;  %v316_v19 = vmax.f32 %v238_v11, 0.0  ;;  %v241_v20 = vadd.f32 %v1343_v0, %v240_v16  ;;  %v300_v21 = vmax.f32 %v174_v5, 0.0 }
  0xe2   :  { %v303_v18 = vmax.f32 %v185_v9, 0.0  ;;  %v319_v23 = vmax.f32 %v249_v15, 0.0 }
  0xe3   :  { %v301_v22 = vmax.f32 %v177_v13, 0.0  ;;  %v317_v25 = vmax.f32 %v241_v20, 0.0 }
  0xe4   :  { %v333_v24 = vpack.c.bf16 %v303_v18, %v302_v17  ;;  %v1353_v28 = vpack.c.bf16 %v319_v23, %v318_v14 }
  0xe5   :  { %v332_v26 = vpack.c.bf16 %v301_v22, %v300_v21  ;;  %v1006_v27 = vpop.f32.mrb[4].mxu0  ;;  %v1356_v31 = vpack.c.bf16 %v317_v25, %v316_v19  ;;  %v1022_v32 = vpop.f32.mrb[4].mxu1 }
  0xe6   :  { %v198_v29 = vadd.f32 %v1006_v27, %v1343_v0  ;;  %v189_v30 = vpop.f32.mrb[5].mxu0  ;;  %v262_v35 = vadd.f32 %v1022_v32, %v1343_v0  ;;  %v253_v36 = vpop.f32.mrb[5].mxu1 }
  0xe7   :  { %v190_v33 = vadd.f32 %v1343_v0, %v189_v30  ;;  %v1007_v34 = vpop.f32.mrb[6].mxu0  ;;  %1048 = vmatprep.mubr.bf16.mxu1 %v332_v26  ;;  %v254_v39 = vadd.f32 %v1343_v0, %v253_v36  ;;  %v1023_v40 = vpop.f32.mrb[6].mxu1 }
  0xe8   :  { %v201_v37 = vadd.f32 %v1007_v34, %v1343_v0  ;;  %v192_v38 = vpop.f32.mrb[7].mxu0  ;;  %1049 = vmatmul.mubr.bf16.vlgmr.msra.gmra.mrb[16].mxu1 %v333_v24  ;;  %v322_v42 = vmax.f32 %v262_v35, 0.0  ;;  %v265_v43 = vadd.f32 %v1023_v40, %v1343_v0  ;;  %v256_v44 = vpop.f32.mrb[7].mxu1  ;;  %v306_v45 = vmax.f32 %v198_v29, 0.0 }
  0xe9   :  { %v193_v41 = vadd.f32 %v1343_v0, %v192_v38  ;;  %v320_v47 = vmax.f32 %v254_v39, 0.0  ;;  %v257_v48 = vadd.f32 %v1343_v0, %v256_v44  ;;  %v304_v49 = vmax.f32 %v190_v33, 0.0 }
  0xea   :  { %v307_v46 = vmax.f32 %v201_v37, 0.0  ;;  %v323_v51 = vmax.f32 %v265_v43, 0.0 }
  0xeb   :  { %v305_v50 = vmax.f32 %v193_v41, 0.0  ;;  %v321_v53 = vmax.f32 %v257_v48, 0.0 }
  0xec   :  { %v335_v52 = vpack.c.bf16 %v307_v46, %v306_v45  ;;  %v1365_v56 = vpack.c.bf16 %v323_v51, %v322_v42 }
  0xed   :  { %v334_v54 = vpack.c.bf16 %v305_v50, %v304_v49  ;;  %v1010_v55 = vpop.f32.mrb[8].mxu0  ;;  %v342_v59 = vpack.c.bf16 %v321_v53, %v320_v47  ;;  %v1026_v60 = vpop.f32.mrb[8].mxu1 }
  0xee   :  { %v214_v57 = vadd.f32 %v1010_v55, %v1343_v0  ;;  %v205_v58 = vpop.f32.mrb[9].mxu0  ;;  %v278_v63 = vadd.f32 %v1026_v60, %v1343_v0  ;;  %v269_v1 = vpop.f32.mrb[9].mxu1 }
  0xef   :  { %v206_v61 = vadd.f32 %v1343_v0, %v205_v58  ;;  %v1011_v62 = vpop.f32.mrb[10].mxu0  ;;  %1052 = vmatprep.mubr.bf16.mxu1 %v334_v54  ;;  %v270_v4 = vadd.f32 %v1343_v0, %v269_v1  ;;  %v1027_v5 = vpop.f32.mrb[10].mxu1 }
  0xf0   :  { %v217_v2 = vadd.f32 %v1011_v62, %v1343_v0  ;;  %v208_v3 = vpop.f32.mrb[11].mxu0  ;;  %1053 = vmatmul.mubr.bf16.gmra.mrb[20].mxu1 %v335_v52  ;;  %v326_v7 = vmax.f32 %v278_v63, 0.0  ;;  %v281_v8 = vadd.f32 %v1027_v5, %v1343_v0  ;;  %v272_v9 = vpop.f32.mrb[11].mxu1  ;;  %v310_v10 = vmax.f32 %v214_v57, 0.0  ;;  %v1149_v52 = vld [vmem:[%s1597_s3 + $0x38] sm:$0xff]  }
  0xf1   :  { %v209_v6 = vadd.f32 %v1343_v0, %v208_v3  ;;  %v324_v12 = vmax.f32 %v270_v4, 0.0  ;;  %v273_v13 = vadd.f32 %v1343_v0, %v272_v9  ;;  %v308_v14 = vmax.f32 %v206_v61, 0.0 }
  0xf2   :  { %v311_v11 = vmax.f32 %v217_v2, 0.0  ;;  %v327_v16 = vmax.f32 %v281_v8, 0.0 }
  0xf3   :  { %v309_v15 = vmax.f32 %v209_v6, 0.0  ;;  %v325_v18 = vmax.f32 %v273_v13, 0.0 }
  0xf4   :  { %v337_v17 = vpack.c.bf16 %v311_v11, %v310_v10  ;;  %v345_v21 = vpack.c.bf16 %v327_v16, %v326_v7 }
  0xf5   :  { %v336_v19 = vpack.c.bf16 %v309_v15, %v308_v14  ;;  %v1014_v20 = vpop.f32.mrb[12].mxu0  ;;  %v344_v24 = vpack.c.bf16 %v325_v18, %v324_v12  ;;  %v1030_v25 = vpop.f32.mrb[12].mxu1 }
  0xf6   :  { %v230_v22 = vadd.f32 %v1014_v20, %v1343_v0  ;;  %v221_v23 = vpop.f32.mrb[13].mxu0  ;;  %v294_v29 = vadd.f32 %v1030_v25, %v1343_v0  ;;  %v285_v30 = vpop.f32.mrb[13].mxu1 }
  0xf7   :  { %v222_v26 = vadd.f32 %v1343_v0, %v221_v23  ;;  %v1015_v27 = vpop.f32.mrb[14].mxu0  ;;  %1056 = vmatprep.mubr.bf16.mxu1 %v336_v19  ;;  %v286_v34 = vadd.f32 %v1343_v0, %v285_v30  ;;  %v1031_v35 = vpop.f32.mrb[14].mxu1 }
  0xf8   :  { %v233_v32 = vadd.f32 %v1015_v27, %v1343_v0  ;;  %v224_v33 = vpop.f32.mrb[15].mxu0  ;;  %1057 = vmatmul.mubr.bf16.gmra.mrb[24].mxu1 %v337_v17  ;;  %v330_v37 = vmax.f32 %v294_v29, 0.0  ;;  %v297_v38 = vadd.f32 %v1031_v35, %v1343_v0  ;;  %v288_v39 = vpop.f32.mrb[15].mxu1  ;;  %v314_v40 = vmax.f32 %v230_v22, 0.0 }
  0xf9   :  { %v225_v36 = vadd.f32 %v1343_v0, %v224_v33  ;;  %v328_v42 = vmax.f32 %v286_v34, 0.0  ;;  %v289_v43 = vadd.f32 %v1343_v0, %v288_v39  ;;  %v312_v44 = vmax.f32 %v222_v26, 0.0  ;;  %v1148_v0 = vld [vmem:[%s1597_s3 + $0x30] sm:$0xff]  }
  0xfa   :  { %v315_v41 = vmax.f32 %v233_v32, 0.0  ;;  %v331_v46 = vmax.f32 %v297_v38, 0.0  ;;  %1092 = vmatprep.subr.bf16.mxu0 %v1148_v0 }
  0xfb   :  { %v313_v45 = vmax.f32 %v225_v36, 0.0  ;;  %v329_v48 = vmax.f32 %v289_v43, 0.0  ;;  %1093 = vmatpush3.bf16.msra.mxu0 %v1148_v0 }
  0xfc   :  { %v339_v47 = vpack.c.bf16 %v315_v41, %v314_v40  ;;  %v347_v50 = vpack.c.bf16 %v331_v46, %v330_v37  ;;  %1094 = vmatprep.subr.bf16.mxu0 %v1149_v52 }
  0xfd   :  { %v338_v49 = vpack.c.bf16 %v313_v45, %v312_v44  ;;  %v346_v51 = vpack.c.bf16 %v329_v48, %v328_v42 }
  0xff   :  { %1060 = vmatprep.mubr.bf16.mxu1 %v338_v49  ;;  %1095 = vmatpush3.bf16.msra.mxu0 %v1149_v52 }
 0x100   :  { %1061 = vmatmul.mubr.bf16.gmra.mrb[28].mxu1 %v339_v47 }
 0x101   :  { %1064 = vmatprep.mubr.bf16.mxu1 %v1356_v31 }
 0x108   :  { %1065 = vmatmul.mubr.bf16.gmra.mrb[32].mxu1 %v1353_v28  ;;  %v1395_v28 = vld [vmem:[%s1598_s4 + $0x1] ss:$0 sm:$0xff] }
 0x109   :  { %1068 = vmatprep.mubr.bf16.mxu1 %v342_v59 }
 0x110   :  { %1069 = vmatmul.mubr.bf16.gmra.mrb[36].mxu1 %v1365_v56 }
 0x111   :  { %1072 = vmatprep.mubr.bf16.mxu1 %v344_v24 }
 0x118   :  { %1073 = vmatmul.mubr.bf16.gmra.mrb[40].mxu1 %v345_v21 }
 0x119   :  { %1076 = vmatprep.mubr.bf16.mxu1 %v346_v51 }
 0x120   :  { %1077 = vmatmul.mubr.bf16.gmra.mrb[44].mxu1 %v347_v50 }
 0x1bb   :  { %v1050_v31 = vpop.f32.mrb[16].mxu1 }
 0x1bc   :  { %v460_v53 = vadd.f32 %v1050_v31, %v1395_v28  ;;  %v451_v54 = vpop.f32.mrb[17].mxu1 }
 0x1bd   :  { %v452_v55 = vadd.f32 %v1395_v28, %v451_v54  ;;  %v1051_v56 = vpop.f32.mrb[18].mxu1 }
 0x1be   :  { %v463_v57 = vadd.f32 %v1051_v56, %v1395_v28  ;;  %v454_v58 = vpop.f32.mrb[19].mxu1  ;;  %v580_v60 = vmax.f32 %v460_v53, 0.0 }
 0x1bf   :  { %v455_v59 = vadd.f32 %v1395_v28, %v454_v58  ;;  %v578_v62 = vmax.f32 %v452_v55, 0.0 }
 0x1c0   :  { %v581_v61 = vmax.f32 %v463_v57, 0.0 }
 0x1c1   :  { %v579_v63 = vmax.f32 %v455_v59, 0.0 }
 0x1c2   :  { %v611_v1 = vpack.c.bf16 %v581_v61, %v580_v60 }
 0x1c3   :  { %v610_v2 = vpack.c.bf16 %v579_v63, %v578_v62  ;;  %v1054_v3 = vpop.f32.mrb[20].mxu1 }
 0x1c4   :  { %v476_v4 = vadd.f32 %v1054_v3, %v1395_v28  ;;  %v467_v5 = vpop.f32.mrb[21].mxu1 }
 0x1c5   :  { %v468_v6 = vadd.f32 %v1395_v28, %v467_v5  ;;  %v1055_v7 = vpop.f32.mrb[22].mxu1  ;;  %1096 = vmatprep.mubr.bf16.mxu0 %v610_v2 }
 0x1c6   :  { %v479_v8 = vadd.f32 %v1055_v7, %v1395_v28  ;;  %v470_v9 = vpop.f32.mrb[23].mxu1  ;;  %1097 = vmatmul.mubr.bf16.vlgmr.msra.gmra.mrb[16].mxu0 %v611_v1  ;;  %v584_v11 = vmax.f32 %v476_v4, 0.0 }
 0x1c7   :  { %v471_v10 = vadd.f32 %v1395_v28, %v470_v9  ;;  %v582_v13 = vmax.f32 %v468_v6, 0.0 }
 0x1c8   :  { %v585_v12 = vmax.f32 %v479_v8, 0.0 }
 0x1c9   :  { %v583_v14 = vmax.f32 %v471_v10, 0.0 }
 0x1ca   :  { %v613_v15 = vpack.c.bf16 %v585_v12, %v584_v11 }
 0x1cb   :  { %v612_v16 = vpack.c.bf16 %v583_v14, %v582_v13  ;;  %v1058_v17 = vpop.f32.mrb[24].mxu1 }
 0x1cc   :  { %v492_v18 = vadd.f32 %v1058_v17, %v1395_v28  ;;  %v483_v19 = vpop.f32.mrb[25].mxu1 }
 0x1cd   :  { %v484_v20 = vadd.f32 %v1395_v28, %v483_v19  ;;  %v1059_v21 = vpop.f32.mrb[26].mxu1  ;;  %1100 = vmatprep.mubr.bf16.mxu0 %v612_v16 }
 0x1ce   :  { %v495_v22 = vadd.f32 %v1059_v21, %v1395_v28  ;;  %v486_v23 = vpop.f32.mrb[27].mxu1  ;;  %1101 = vmatmul.mubr.bf16.gmra.mrb[20].mxu0 %v613_v15  ;;  %v588_v25 = vmax.f32 %v492_v18, 0.0 }
 0x1cf   :  { %v487_v24 = vadd.f32 %v1395_v28, %v486_v23  ;;  %v586_v27 = vmax.f32 %v484_v20, 0.0 }
 0x1d0   :  { %v589_v26 = vmax.f32 %v495_v22, 0.0 }
 0x1d1   :  { %v587_v29 = vmax.f32 %v487_v24, 0.0 }
 0x1d2   :  { %v615_v30 = vpack.c.bf16 %v589_v26, %v588_v25 }
 0x1d3   :  { %v614_v32 = vpack.c.bf16 %v587_v29, %v586_v27  ;;  %v1062_v33 = vpop.f32.mrb[28].mxu1 }
 0x1d4   :  { %v508_v34 = vadd.f32 %v1062_v33, %v1395_v28  ;;  %v499_v35 = vpop.f32.mrb[29].mxu1 }
 0x1d5   :  { %v500_v36 = vadd.f32 %v1395_v28, %v499_v35  ;;  %v1063_v37 = vpop.f32.mrb[30].mxu1  ;;  %1104 = vmatprep.mubr.bf16.mxu0 %v614_v32 }
 0x1d6   :  { %v511_v38 = vadd.f32 %v1063_v37, %v1395_v28  ;;  %v502_v39 = vpop.f32.mrb[31].mxu1  ;;  %1105 = vmatmul.mubr.bf16.gmra.mrb[24].mxu0 %v615_v30  ;;  %v592_v41 = vmax.f32 %v508_v34, 0.0 }
 0x1d7   :  { %v503_v40 = vadd.f32 %v1395_v28, %v502_v39  ;;  %v590_v43 = vmax.f32 %v500_v36, 0.0 }
 0x1d8   :  { %v593_v42 = vmax.f32 %v511_v38, 0.0 }
 0x1d9   :  { %v591_v44 = vmax.f32 %v503_v40, 0.0  ;;  %v1432_v40 = vld [vmem:[%s1598_s4 + $0x2] ss:$0 sm:$0xff] }
 0x1da   :  { %v617_v45 = vpack.c.bf16 %v593_v42, %v592_v41 }
 0x1db   :  { %v616_v46 = vpack.c.bf16 %v591_v44, %v590_v43  ;;  %v1066_v47 = vpop.f32.mrb[32].mxu1 }
 0x1dc   :  { %v524_v48 = vadd.f32 %v1066_v47, %v1395_v28  ;;  %v515_v49 = vpop.f32.mrb[33].mxu1 }
 0x1dd   :  { %v516_v50 = vadd.f32 %v1395_v28, %v515_v49  ;;  %v1067_v51 = vpop.f32.mrb[34].mxu1  ;;  %1108 = vmatprep.mubr.bf16.mxu0 %v616_v46 }
 0x1de   :  { %v527_v0 = vadd.f32 %v1067_v51, %v1395_v28  ;;  %v518_v52 = vpop.f32.mrb[35].mxu1  ;;  %1109 = vmatmul.mubr.bf16.gmra.mrb[28].mxu0 %v617_v45  ;;  %v596_v53 = vmax.f32 %v524_v48, 0.0 }
 0x1df   :  { %v519_v31 = vadd.f32 %v1395_v28, %v518_v52  ;;  %v594_v55 = vmax.f32 %v516_v50, 0.0 }
 0x1e0   :  { %v597_v54 = vmax.f32 %v527_v0, 0.0 }
 0x1e1   :  { %v595_v56 = vmax.f32 %v519_v31, 0.0 }
 0x1e2   :  { %v619_v57 = vpack.c.bf16 %v597_v54, %v596_v53 }
 0x1e3   :  { %v618_v58 = vpack.c.bf16 %v595_v56, %v594_v55  ;;  %v1070_v59 = vpop.f32.mrb[36].mxu1 }
 0x1e4   :  { %v540_v60 = vadd.f32 %v1070_v59, %v1395_v28  ;;  %v531_v61 = vpop.f32.mrb[37].mxu1 }
 0x1e5   :  { %v532_v62 = vadd.f32 %v1395_v28, %v531_v61  ;;  %v1071_v63 = vpop.f32.mrb[38].mxu1  ;;  %1112 = vmatprep.mubr.bf16.mxu0 %v618_v58 }
 0x1e6   :  { %v543_v1 = vadd.f32 %v1071_v63, %v1395_v28  ;;  %v534_v2 = vpop.f32.mrb[39].mxu1  ;;  %1113 = vmatmul.mubr.bf16.gmra.mrb[32].mxu0 %v619_v57  ;;  %v600_v4 = vmax.f32 %v540_v60, 0.0 }
 0x1e7   :  { %v535_v3 = vadd.f32 %v1395_v28, %v534_v2  ;;  %v598_v6 = vmax.f32 %v532_v62, 0.0 }
 0x1e8   :  { %v601_v5 = vmax.f32 %v543_v1, 0.0 }
 0x1e9   :  { %v599_v7 = vmax.f32 %v535_v3, 0.0 }
 0x1ea   :  { %v621_v8 = vpack.c.bf16 %v601_v5, %v600_v4 }
 0x1eb   :  { %v620_v9 = vpack.c.bf16 %v599_v7, %v598_v6  ;;  %v1074_v10 = vpop.f32.mrb[40].mxu1 }
 0x1ec   :  { %v556_v11 = vadd.f32 %v1074_v10, %v1395_v28  ;;  %v547_v12 = vpop.f32.mrb[41].mxu1 }
 0x1ed   :  { %v548_v13 = vadd.f32 %v1395_v28, %v547_v12  ;;  %v1075_v14 = vpop.f32.mrb[42].mxu1  ;;  %1116 = vmatprep.mubr.bf16.mxu0 %v620_v9 }
 0x1ee   :  { %v559_v15 = vadd.f32 %v1075_v14, %v1395_v28  ;;  %v550_v16 = vpop.f32.mrb[43].mxu1  ;;  %1117 = vmatmul.mubr.bf16.gmra.mrb[36].mxu0 %v621_v8  ;;  %v604_v18 = vmax.f32 %v556_v11, 0.0 }
 0x1ef   :  { %v551_v17 = vadd.f32 %v1395_v28, %v550_v16  ;;  %v602_v20 = vmax.f32 %v548_v13, 0.0 }
 0x1f0   :  { %v605_v19 = vmax.f32 %v559_v15, 0.0 }
 0x1f1   :  { %v603_v21 = vmax.f32 %v551_v17, 0.0 }
 0x1f2   :  { %v623_v22 = vpack.c.bf16 %v605_v19, %v604_v18 }
 0x1f3   :  { %v622_v23 = vpack.c.bf16 %v603_v21, %v602_v20  ;;  %v1078_v24 = vpop.f32.mrb[44].mxu1 }
 0x1f4   :  { %v572_v25 = vadd.f32 %v1078_v24, %v1395_v28  ;;  %v563_v26 = vpop.f32.mrb[45].mxu1 }
 0x1f5   :  { %v564_v27 = vadd.f32 %v1395_v28, %v563_v26  ;;  %v1079_v29 = vpop.f32.mrb[46].mxu1  ;;  %1120 = vmatprep.mubr.bf16.mxu0 %v622_v23 }
 0x1f6   :  { %v575_v30 = vadd.f32 %v1079_v29, %v1395_v28  ;;  %v566_v32 = vpop.f32.mrb[47].mxu1  ;;  %1121 = vmatmul.mubr.bf16.gmra.mrb[40].mxu0 %v623_v22  ;;  %v608_v34 = vmax.f32 %v572_v25, 0.0 }
 0x1f7   :  { %v567_v33 = vadd.f32 %v1395_v28, %v566_v32  ;;  %v606_v36 = vmax.f32 %v564_v27, 0.0 }
 0x1f8   :  { %v609_v35 = vmax.f32 %v575_v30, 0.0 }
 0x1f9   :  { %v607_v37 = vmax.f32 %v567_v33, 0.0 }
 0x1fa   :  { %v625_v38 = vpack.c.bf16 %v609_v35, %v608_v34 }
 0x1fb   :  { %v624_v39 = vpack.c.bf16 %v607_v37, %v606_v36 }
 0x1fd   :  { %1124 = vmatprep.mubr.bf16.mxu0 %v624_v39 }
 0x1fe   :  { %1125 = vmatmul.mubr.bf16.gmra.mrb[44].mxu0 %v625_v38 }
 0x299   :  { %v1098_v41 = vpop.f32.mrb[16].mxu0 }
 0x29a   :  { %v738_v42 = vadd.f32 %v1098_v41, %v1432_v40  ;;  %v729_v43 = vpop.f32.mrb[17].mxu0 }
 0x29b   :  { %v730_v28 = vadd.f32 %v1432_v40, %v729_v43  ;;  %v1099_v44 = vpop.f32.mrb[18].mxu0 }
 0x29c   :  { %859 = vst.msk [vmem:[%s1599_s5 + $0x10] sm:$0xff] %vm856_vm1, %v738_v42  ;;  %v741_v45 = vadd.f32 %v1099_v44, %v1432_v40  ;;  %v732_v46 = vpop.f32.mrb[19].mxu0 }
 0x29d   :  { %857 = vst.msk [vmem:[%s1599_s5] sm:$0xff] %vm856_vm1, %v730_v28  ;;  %v733_v47 = vadd.f32 %v1432_v40, %v732_v46 }
 0x29e   :  { %860 = vst.msk [vmem:[%s1599_s5 + $0x18] sm:$0xff] %vm856_vm1, %v741_v45 }
 0x29f   :  { %858 = vst.msk [vmem:[%s1599_s5 + $0x8] sm:$0xff] %vm856_vm1, %v733_v47 }
 0x2a1   :  { %v1102_v48 = vpop.f32.mrb[20].mxu0 }
 0x2a2   :  { %v754_v49 = vadd.f32 %v1102_v48, %v1432_v40  ;;  %v745_v50 = vpop.f32.mrb[21].mxu0 }
 0x2a3   :  { %v746_v51 = vadd.f32 %v1432_v40, %v745_v50  ;;  %v1103_v0 = vpop.f32.mrb[22].mxu0 }
 0x2a4   :  { %863 = vst.msk [vmem:[%s1599_s5 + $0x30] sm:$0xff] %vm856_vm1, %v754_v49  ;;  %v757_v52 = vadd.f32 %v1103_v0, %v1432_v40  ;;  %v748_v31 = vpop.f32.mrb[23].mxu0 }
 0x2a5   :  { %861 = vst.msk [vmem:[%s1599_s5 + $0x20] sm:$0xff] %vm856_vm1, %v746_v51  ;;  %v749_v53 = vadd.f32 %v1432_v40, %v748_v31 }
 0x2a6   :  { %864 = vst.msk [vmem:[%s1599_s5 + $0x38] sm:$0xff] %vm856_vm1, %v757_v52 }
 0x2a7   :  { %862 = vst.msk [vmem:[%s1599_s5 + $0x28] sm:$0xff] %vm856_vm1, %v749_v53 }
 0x2a9   :  { %v1106_v54 = vpop.f32.mrb[24].mxu0 }
 0x2aa   :  { %v770_v55 = vadd.f32 %v1106_v54, %v1432_v40  ;;  %v761_v56 = vpop.f32.mrb[25].mxu0 }
 0x2ab   :  { %v762_v57 = vadd.f32 %v1432_v40, %v761_v56  ;;  %v1107_v58 = vpop.f32.mrb[26].mxu0 }
 0x2ac   :  { %867 = vst.msk [vmem:[%s1599_s5 + $0x50] sm:$0xff] %vm856_vm1, %v770_v55  ;;  %v773_v59 = vadd.f32 %v1107_v58, %v1432_v40  ;;  %v764_v60 = vpop.f32.mrb[27].mxu0 }
 0x2ad   :  { %865 = vst.msk [vmem:[%s1599_s5 + $0x40] sm:$0xff] %vm856_vm1, %v762_v57  ;;  %v765_v61 = vadd.f32 %v1432_v40, %v764_v60 }
 0x2ae   :  { %868 = vst.msk [vmem:[%s1599_s5 + $0x58] sm:$0xff] %vm856_vm1, %v773_v59 }
 0x2af   :  { %866 = vst.msk [vmem:[%s1599_s5 + $0x48] sm:$0xff] %vm856_vm1, %v765_v61 }
 0x2b1   :  { %v1110_v62 = vpop.f32.mrb[28].mxu0 }
 0x2b2   :  { %v786_v63 = vadd.f32 %v1110_v62, %v1432_v40  ;;  %v777_v1 = vpop.f32.mrb[29].mxu0 }
 0x2b3   :  { %v778_v2 = vadd.f32 %v1432_v40, %v777_v1  ;;  %v1111_v3 = vpop.f32.mrb[30].mxu0 }
 0x2b4   :  { %871 = vst.msk [vmem:[%s1599_s5 + $0x70] sm:$0xff] %vm856_vm1, %v786_v63  ;;  %v789_v4 = vadd.f32 %v1111_v3, %v1432_v40  ;;  %v780_v5 = vpop.f32.mrb[31].mxu0 }
 0x2b5   :  { %869 = vst.msk [vmem:[%s1599_s5 + $0x60] sm:$0xff] %vm856_vm1, %v778_v2  ;;  %v781_v6 = vadd.f32 %v1432_v40, %v780_v5 }
 0x2b6   :  { %872 = vst.msk [vmem:[%s1599_s5 + $0x78] sm:$0xff] %vm856_vm1, %v789_v4 }
 0x2b7   :  { %870 = vst.msk [vmem:[%s1599_s5 + $0x68] sm:$0xff] %vm856_vm1, %v781_v6 }
 0x2b9   :  { %v1114_v7 = vpop.f32.mrb[32].mxu0 }
 0x2ba   :  { %v802_v8 = vadd.f32 %v1114_v7, %v1432_v40  ;;  %v793_v9 = vpop.f32.mrb[33].mxu0 }
 0x2bb   :  { %v794_v10 = vadd.f32 %v1432_v40, %v793_v9  ;;  %v1115_v11 = vpop.f32.mrb[34].mxu0 }
 0x2bc   :  { %875 = vst.msk [vmem:[%s1599_s5 + $0x90] sm:$0xff] %vm856_vm1, %v802_v8  ;;  %v805_v12 = vadd.f32 %v1115_v11, %v1432_v40  ;;  %v796_v13 = vpop.f32.mrb[35].mxu0 }
 0x2bd   :  { %873 = vst.msk [vmem:[%s1599_s5 + $0x80] sm:$0xff] %vm856_vm1, %v794_v10  ;;  %v797_v14 = vadd.f32 %v1432_v40, %v796_v13 }
 0x2be   :  { %876 = vst.msk [vmem:[%s1599_s5 + $0x98] sm:$0xff] %vm856_vm1, %v805_v12 }
 0x2bf   :  { %874 = vst.msk [vmem:[%s1599_s5 + $0x88] sm:$0xff] %vm856_vm1, %v797_v14 }
 0x2c1   :  { %v1118_v15 = vpop.f32.mrb[36].mxu0 }
 0x2c2   :  { %v818_v16 = vadd.f32 %v1118_v15, %v1432_v40  ;;  %v809_v17 = vpop.f32.mrb[37].mxu0 }
 0x2c3   :  { %v810_v18 = vadd.f32 %v1432_v40, %v809_v17  ;;  %v1119_v19 = vpop.f32.mrb[38].mxu0 }
 0x2c4   :  { %879 = vst.msk [vmem:[%s1599_s5 + $0xb0] sm:$0xff] %vm856_vm1, %v818_v16  ;;  %v821_v20 = vadd.f32 %v1119_v19, %v1432_v40  ;;  %v812_v21 = vpop.f32.mrb[39].mxu0 }
 0x2c5   :  { %877 = vst.msk [vmem:[%s1599_s5 + $0xa0] sm:$0xff] %vm856_vm1, %v810_v18  ;;  %v813_v22 = vadd.f32 %v1432_v40, %v812_v21 }
 0x2c6   :  { %880 = vst.msk [vmem:[%s1599_s5 + $0xb8] sm:$0xff] %vm856_vm1, %v821_v20 }
 0x2c7   :  { %878 = vst.msk [vmem:[%s1599_s5 + $0xa8] sm:$0xff] %vm856_vm1, %v813_v22 }
 0x2c9   :  { %v1122_v23 = vpop.f32.mrb[40].mxu0 }
 0x2ca   :  { %v834_v24 = vadd.f32 %v1122_v23, %v1432_v40  ;;  %v825_v25 = vpop.f32.mrb[41].mxu0 }
 0x2cb   :  { %v826_v26 = vadd.f32 %v1432_v40, %v825_v25  ;;  %v1123_v27 = vpop.f32.mrb[42].mxu0 }
 0x2cc   :  { %883 = vst.msk [vmem:[%s1599_s5 + $0xd0] sm:$0xff] %vm856_vm1, %v834_v24  ;;  %v837_v29 = vadd.f32 %v1123_v27, %v1432_v40  ;;  %v828_v30 = vpop.f32.mrb[43].mxu0 }
 0x2cd   :  { %881 = vst.msk [vmem:[%s1599_s5 + $0xc0] sm:$0xff] %vm856_vm1, %v826_v26  ;;  %v829_v32 = vadd.f32 %v1432_v40, %v828_v30 }
 0x2ce   :  { %884 = vst.msk [vmem:[%s1599_s5 + $0xd8] sm:$0xff] %vm856_vm1, %v837_v29 }
 0x2cf   :  { %882 = vst.msk [vmem:[%s1599_s5 + $0xc8] sm:$0xff] %vm856_vm1, %v829_v32 }
 0x2d1   :  { %v1126_v33 = vpop.f32.mrb[44].mxu0 }
 0x2d2   :  { %v850_v34 = vadd.f32 %v1126_v33, %v1432_v40  ;;  %v841_v35 = vpop.f32.mrb[45].mxu0 }
 0x2d3   :  { %v842_v36 = vadd.f32 %v1432_v40, %v841_v35  ;;  %v1127_v37 = vpop.f32.mrb[46].mxu0 }
 0x2d4   :  { %887 = vst.msk [vmem:[%s1599_s5 + $0xf0] sm:$0xff] %vm856_vm1, %v850_v34  ;;  %v853_v38 = vadd.f32 %v1127_v37, %v1432_v40  ;;  %v844_v39 = vpop.f32.mrb[47].mxu0 }
 0x2d5   :  { %885 = vst.msk [vmem:[%s1599_s5 + $0xe0] sm:$0xff] %vm856_vm1, %v842_v36  ;;  %v845_v41 = vadd.f32 %v1432_v40, %v844_v39 }
 0x2d6   :  { %888 = vst.msk [vmem:[%s1599_s5 + $0xf8] sm:$0xff] %vm856_vm1, %v853_v38 }
 0x2d7   :  { %886 = vst.msk [vmem:[%s1599_s5 + $0xe8] sm:$0xff] %vm856_vm1, %v845_v41 }

</bundles_post_ra>
